<compile_context>
chip_gen: v6e
topology: v6e:2x2x1
jax: 0.10.0
libtpu: 0.0.40
codegen_flags: <defaults>
</compile_context>

<pallas_src>
import jax
import jax.numpy as jnp
from jax import lax
from jax.experimental import pallas as pl
from jax.experimental.pallas import tpu as pltpu

EPS = 1e-12  # F.normalize default eps


def prepare_pooler_params(w_pool, b_pool, compute_dtype=jnp.bfloat16):
    """One-time (load-time) parameter prep: cast W to the compute dtype,
    keep the bias in f32 as a (1, H) row for the kernel."""
    H = w_pool.shape[0]
    return w_pool.astype(compute_dtype), b_pool.reshape(1, H).astype(jnp.float32)


def _pooler_l2norm_kernel(x_ref, w_ref, b_ref, o_ref):
    # x_ref: [TB, TK]   CLS hidden-state tile
    # w_ref: [TK, H]    pooler-weight K-tile (compute dtype, e.g. bf16)
    # b_ref: [1, H]     pooler bias (f32, resident)
    # o_ref: [TB, H]    f32 output block, resident across the K axis
    k = pl.program_id(1)

    @pl.when(k == 0)
    def _init():
        # Seed the accumulator with the bias (drops the epilogue add).
        o_ref[...] = jnp.broadcast_to(b_ref[...].astype(jnp.float32),
                                      o_ref.shape)

    # MXU partial product for this K tile, f32 accumulation directly into the
    # resident output block (no separate VMEM scratch).
    x_tile = x_ref[...].astype(w_ref.dtype)
    o_ref[...] += jnp.dot(x_tile, w_ref[...],
                          preferred_element_type=jnp.float32)

    @pl.when(k == pl.num_programs(1) - 1)
    def _epilogue():
        # BERT-style pooler: tanh(x @ W + b)   (f32 on VPU/EUP)
        pooled = jnp.tanh(o_ref[...])
        # F.normalize(pooled, p=2, dim=-1) == x * rsqrt(max(||x||^2, eps^2))
        sq_sum = jnp.sum(pooled * pooled, axis=-1, keepdims=True)
        inv_norm = lax.rsqrt(jnp.maximum(sq_sum, EPS * EPS))
        o_ref[...] = pooled * inv_norm


def _select_tiles(B, K, H, w_itemsize, x_itemsize, budget_bytes=10 << 20):
    """Pick (tb, tk) so double-buffered tiles + resident output stay well under
    the default scoped-VMEM limit on every chip (v5e: 16 MiB)."""
    # Batch tile: rows are independent (L2 norm is per-row), so tb only needs
    # to respect the (8,128) rule (tb == B always does).
    tb = B
    if B > 512:
        for cand in (512, 384, 256, 128, 64, 32, 16, 8):
            if B % cand == 0:
                tb = cand
                break

    def vmem_bytes(tk):
        return (2 * tk * H * w_itemsize      # W tile (double-buffered)
                + 2 * tb * tk * x_itemsize   # x tile (double-buffered)
                + 2 * tb * H * 4             # resident f32 output block
                + 2 * H * 4)                 # bias

    # Single grid step whenever the whole weight fits: no accumulator RMW,
    # no per-step (~0.35 us) grid overhead — the common case for pooler-sized H.
    if vmem_bytes(K) <= budget_bytes:
        return tb, K
    # Otherwise: largest MXU-friendly (multiple of 256, then 128) divisor of K
    # that fits the budget.  ~85% of HBM roofline needs >= 512-wide tiles.
    for tk in (2048, 1536, 1024, 768, 512, 384, 256, 128):
        if K % tk == 0 and vmem_bytes(tk) <= budget_bytes:
            return tb, tk
    return tb, (128 if K % 128 == 0 else K)


def ipc_classification_forward(x, w_pool, b_pool2d):
    """x: [B, H] CLS hidden state (f32 or bf16)
    w_pool: [H, H] pooler weight, ALREADY in the compute dtype (see
            prepare_pooler_params — do not cast per call)
    b_pool2d: [1, H] f32 pooler bias
    returns [B, H] f32 unit-L2-norm embedding."""
    B, K = x.shape
    K_w, H = w_pool.shape
    assert K_w == K and H == K and b_pool2d.shape == (1, H)

    w_itemsize = jnp.dtype(w_pool.dtype).itemsize
    x_itemsize = jnp.dtype(x.dtype).itemsize
    tb, tk = _select_tiles(B, K, H, w_itemsize, x_itemsize)
    num_b = B // tb
    num_k = K // tk

    cost = pl.CostEstimate(
        flops=2 * B * H * K,
        transcendentals=B * H + B,                       # tanh + rsqrt
        bytes_accessed=(num_b * K * H * w_itemsize       # W stream (per B tile)
                        + B * K * x_itemsize             # x
                        + H * 4                          # bias
                        + B * H * 4),                    # output
    )

    return pl.pallas_call(
        _pooler_l2norm_kernel,
        out_shape=jax.ShapeDtypeStruct((B, H), jnp.float32),
        grid_spec=pltpu.PrefetchScalarGridSpec(
            num_scalar_prefetch=0,
            grid=(num_b, num_k),                            # (batch, K-reduction)
            in_specs=[
                pl.BlockSpec((tb, tk), lambda b, k: (b, k)),  # x tile
                pl.BlockSpec((tk, H), lambda b, k: (k, 0)),   # W K-tile (stream)
                pl.BlockSpec((1, H), lambda b, k: (0, 0)),    # bias (resident)
            ],
            out_specs=pl.BlockSpec((tb, H), lambda b, k: (b, 0)),  # resident acc
        ),
        compiler_params=pltpu.CompilerParams(
            dimension_semantics=("parallel", "arbitrary"),  # megacore over B
        ),
        cost_estimate=cost,
    )(x, w_pool, b_pool2d)


if __name__ == "__main__":
    # Small, lane-friendly demo shapes: batch=8, hidden=256.
    B, H = 8, 256
    key = jax.random.PRNGKey(0)
    k_x, k_w, k_b = jax.random.split(key, 3)

    # Deterministic synthetic "encoder CLS hidden state" and pooler params.
    x = jax.random.normal(k_x, (B, H), dtype=jnp.float32)
    w_pool_f32 = jax.random.normal(k_w, (H, H), dtype=jnp.float32) * 0.02
    b_pool_f32 = jax.random.normal(k_b, (H,), dtype=jnp.float32) * 0.02

    # One-time, load-time parameter prep (NOT per forward call).
    w_pool, b_pool2d = prepare_pooler_params(w_pool_f32, b_pool_f32,
                                             compute_dtype=jnp.bfloat16)

    out = ipc_classification_forward(x, w_pool, b_pool2d)
    out = jax.block_until_ready(out)

    # Reference in plain JAX, mirroring the bf16-weight / f32-accumulate path.
    pooled_ref = jnp.tanh(
        jnp.dot(x.astype(jnp.bfloat16), w_pool,
                preferred_element_type=jnp.float32) + b_pool_f32
    )
    ref = pooled_ref / jnp.maximum(
        jnp.linalg.norm(pooled_ref, axis=-1, keepdims=True), EPS
    )

    assert out.shape == (B, H)
    assert out.dtype == jnp.float32
    assert jnp.allclose(out, ref, atol=1e-3, rtol=1e-3), (
        float(jnp.max(jnp.abs(out - ref))))
    # Rows should be unit-norm.
    assert jnp.allclose(jnp.linalg.norm(out, axis=-1), 1.0, atol=1e-4)

    print("KERNEL_OK")
</pallas_src>

<mosaic_0001>
module attributes {stable_mosaic.version = 11 : i64} {
  func.func @_pooler_l2norm_kernel(%arg0: i32, %arg1: i32, %arg2: memref<8x256xf32, #tpu.memory_space<vmem>>, %arg3: memref<256x256xbf16, #tpu.memory_space<vmem>>, %arg4: memref<1x256xf32, #tpu.memory_space<vmem>>, %arg5: memref<8x256xf32, #tpu.memory_space<vmem>>) attributes {dimension_semantics = [#tpu.dimension_semantics<parallel>, #tpu.dimension_semantics<arbitrary>], iteration_bounds = array<i64: 1, 1>, scalar_prefetch = 0 : i64, scratch_operands = 0 : i64, tpu.core_type = #tpu.core_type<tc>, window_params = [{transform_indices = @transform_0, window_bounds = array<i64: 8, 256>}, {transform_indices = @transform_1, window_bounds = array<i64: 256, 256>}, {pipeline_mode = #tpu.pipeline_mode<synchronous>, transform_indices = @transform_2, window_bounds = array<i64: 1, 256>}, {transform_indices = @transform_3, window_bounds = array<i64: 8, 256>}]} {
    %c0_i32 = arith.constant 0 : i32
    %0 = arith.cmpi eq, %arg1, %c0_i32 : i32
    %1 = arith.extui %0 : i1 to i32
    %c0_i32_0 = arith.constant 0 : i32
    %2 = arith.cmpi ne, %1, %c0_i32_0 : i32
    scf.if %2 {
      %c0_10 = arith.constant 0 : index
      %c0_11 = arith.constant 0 : index
      %13 = vector.load %arg4[%c0_10, %c0_11] : memref<1x256xf32, #tpu.memory_space<vmem>>, vector<1x256xf32>
      %14 = vector.shape_cast %13 : vector<1x256xf32> to vector<1x256xf32>
      %15 = vector.broadcast %14 : vector<1x256xf32> to vector<8x256xf32>
      %c0_12 = arith.constant 0 : index
      %c0_13 = arith.constant 0 : index
      %16 = vector.load %arg5[%c0_12, %c0_13] : memref<8x256xf32, #tpu.memory_space<vmem>>, vector<8x256xf32>
      tpu.vector_store %arg5[%c0_12, %c0_13], %15 {strides = array<i32>} : memref<8x256xf32, #tpu.memory_space<vmem>>, vector<8x256xf32>,
    } else {
    }
    %c0 = arith.constant 0 : index
    %c0_1 = arith.constant 0 : index
    %3 = vector.load %arg2[%c0, %c0_1] : memref<8x256xf32, #tpu.memory_space<vmem>>, vector<8x256xf32>
    %4 = arith.truncf %3 : vector<8x256xf32> to vector<8x256xbf16>
    %c0_2 = arith.constant 0 : index
    %c0_3 = arith.constant 0 : index
    %5 = vector.load %arg5[%c0_2, %c0_3] : memref<8x256xf32, #tpu.memory_space<vmem>>, vector<8x256xf32>
    %c0_4 = arith.constant 0 : index
    %c0_5 = arith.constant 0 : index
    %6 = vector.load %arg3[%c0_4, %c0_5] : memref<256x256xbf16, #tpu.memory_space<vmem>>, vector<256x256xbf16>
    %cst = arith.constant dense<0.000000e+00> : vector<8x256xf32>
    %7 = tpu.matmul %4, %6, %cst {dimension_numbers = #tpu.dot_dimension_numbers<[1], [0], [0], [1], [0, 0, 1, 1], [], []>} : vector<8x256xbf16>, vector<256x256xbf16>, vector<8x256xf32> -> vector<8x256xf32>
    %8 = arith.addf %5, %7 : vector<8x256xf32>
    %c0_6 = arith.constant 0 : index
    %c0_7 = arith.constant 0 : index
    %9 = vector.load %arg5[%c0_6, %c0_7] : memref<8x256xf32, #tpu.memory_space<vmem>>, vector<8x256xf32>
    tpu.vector_store %arg5[%c0_6, %c0_7], %8 {strides = array<i32>} : memref<8x256xf32, #tpu.memory_space<vmem>>, vector<8x256xf32>,
    %c0_i32_8 = arith.constant 0 : i32
    %10 = arith.cmpi eq, %arg1, %c0_i32_8 : i32
    %11 = arith.extui %10 : i1 to i32
    %c0_i32_9 = arith.constant 0 : i32
    %12 = arith.cmpi ne, %11, %c0_i32_9 : i32
    scf.if %12 {
      %c0_10 = arith.constant 0 : index
      %c0_11 = arith.constant 0 : index
      %13 = vector.load %arg5[%c0_10, %c0_11] : memref<8x256xf32, #tpu.memory_space<vmem>>, vector<8x256xf32>
      %14 = math.tanh %13 : vector<8x256xf32>
      %15 = arith.mulf %14, %14 : vector<8x256xf32>
      %cst_12 = arith.constant dense<0.000000e+00> : vector<8xf32>
      %16 = vector.multi_reduction <add>, %15, %cst_12 [1] : vector<8x256xf32> to vector<8xf32>
      %17 = vector.shape_cast %16 : vector<8xf32> to vector<8x1xf32>
      %cst_13 = arith.constant 1.000000e-24 : f32
      %18 = vector.broadcast %cst_13 : f32 to vector<8x1xf32>
      %19 = arith.maximumf %17, %18 : vector<8x1xf32>
      %20 = math.rsqrt %19 : vector<8x1xf32>
      %21 = vector.broadcast %20 : vector<8x1xf32> to vector<8x256xf32>
      %22 = arith.mulf %14, %21 : vector<8x256xf32>
      %c0_14 = arith.constant 0 : index
      %c0_15 = arith.constant 0 : index
      %23 = vector.load %arg5[%c0_14, %c0_15] : memref<8x256xf32, #tpu.memory_space<vmem>>, vector<8x256xf32>
      tpu.vector_store %arg5[%c0_14, %c0_15], %22 {strides = array<i32>} : memref<8x256xf32, #tpu.memory_space<vmem>>, vector<8x256xf32>,
    } else {
    }
    return
  }
  func.func @transform_0(%arg0: i32, %arg1: i32) -> (i32, i32) {
    %c0_i32 = arith.constant 0 : i32
    return %arg0, %arg1 : i32, i32
  }
  func.func @transform_1(%arg0: i32, %arg1: i32) -> (i32, i32) {
    %c0_i32 = arith.constant 0 : i32
    %c0_i32_0 = arith.constant 0 : i32
    return %arg1, %c0_i32 : i32, i32
  }
  func.func @transform_2(%arg0: i32, %arg1: i32) -> (i32, i32) {
    %c0_i32 = arith.constant 0 : i32
    %c0_i32_0 = arith.constant 0 : i32
    %c0_i32_1 = arith.constant 0 : i32
    return %c0_i32, %c0_i32_0 : i32, i32
  }
  func.func @transform_3(%arg0: i32, %arg1: i32) -> (i32, i32) {
    %c0_i32 = arith.constant 0 : i32
    %c0_i32_0 = arith.constant 0 : i32
    return %arg0, %c0_i32 : i32, i32
  }
}

</mosaic_0001>

<bundles_post_ra>
// kernel: tpu_custom_call.1
= control target key start
LH: loop header
LB: loop body
LE: loop exit
PB: predicated region body
PF: predicated region fallthrough
CT: control target
= control target key end

     0   :  { %8 = vsyncpa [#allocation3], 0  ;;  %s530_s0 = inlined_call_operand.hbm [shape: f32[8,256], index: 0, kind: input, shape index: {}]   ;;  %s531_s1 = inlined_call_operand.hbm [shape: bf16[256,256], index: 1, kind: input, shape index: {}]   ;;  %s532_s2 = inlined_call_operand.vmem [shape: f32[1,256], index: 2, kind: input, shape index: {}]   ;;  %s533_s3 = inlined_call_operand.hbm [shape: f32[8,256], index: 3, kind: output, shape index: {}]  }
   0x1   :  { %9 = vsyncpa [#allocation6], 0 }
   0x2   :  { %10 = vsyncpa [#allocation4], 0  ;;  %s493_s12 = smov [#allocation2]   ;;  %s494_s14 = smov [#allocation5]  }
   0x3   :  { %s17_s13 = sshll.u32 %s493_s12, 4  ;;  %s26_s15 = sshll.u32 %s494_s14, 4  ;;  %s18_s13 = int_to_ptr.vmem [resolvable:$true] %s17_s13  ;;  %s27_s15 = int_to_ptr.vmem [resolvable:$true] %s26_s15 }
   0x4   :  { %s435_s16 = scalar_lea.vmem %s18_s13, 256  ;;  %p440_p1 = scmp.lt.s32.totalorder %s18_s13, %s18_s13 }
   0x5   :  { %p436_p0 = scmp.ne.s32.totalorder %s18_s13, %s435_s16  ;;  %p441_p2 = scmp.lt.s32.totalorder %s435_s16, %s435_s16 }
   0x7   :  { %p442_p3 = por %p441_p2, %p440_p1 }
   0x9   :  { %p443_p4 = pnand %p442_p3, %p436_p0 }
   0xb   :  { %446 = shalt.err (!%p443_p4)
}
   0xc   :  { %20 = dma.hbm_to_vmem [thread:$0]  %s530_s0, 256, %s18_s13, [#allocation3]  }
   0xd   :  { %s455_s19 = scalar_lea.vmem %s27_s15, 4096  ;;  %p460_p6 = scmp.lt.s32.totalorder %s27_s15, %s27_s15 }
   0xe   :  { %p456_p5 = scmp.ne.s32.totalorder %s27_s15, %s455_s19  ;;  %p461_p7 = scmp.lt.s32.totalorder %s455_s19, %s455_s19 }
  0x10   :  { %p462_p8 = por %p461_p7, %p460_p6 }
  0x12   :  { %p463_p9 = pnand %p462_p8, %p456_p5 }
  0x14   :  { %466 = shalt.err (!%p463_p9)
}
  0x15   :  { %s495_s20 = smov 128   ;;  %s496_s21 = smov 8  }
  0x16   :  { %32 = dma.hbm_to_vmem [thread:$0]  %s531_s1, 4096, %s27_s15, [#allocation6], %s495_s20, %s495_s20, %s496_s21  }
  0x17   :  { %487 = dma.done.wait [#allocation3], 256  }
  0x18   :  { %488 = vsyncadd [#allocation3], 4294967040 }
  0x19   :  { %489 = dma.done.wait [#allocation6], 4096  }
  0x1a   :  { %490 = vsyncadd [#allocation6], 4294963200  ;;  %v373_v0 = vld [vmem:[#allocation5 + $0x74] ss:$8 sps:$4 sm:$0xff]   ;;  %v375_v1 = vld [vmem:[#allocation5 + $0x70] ss:$8 sps:$4 sm:$0xff]   ;;  %v47_v36 = vlaneseq }
  0x1b   :  { %257 = vmatprep.subr.bf16.mxu0 %v373_v0  ;;  %v376_v2 = vld [vmem:[#allocation5 + $0x64] ss:$8 sps:$4 sm:$0xff]   ;;  %v378_v3 = vld [vmem:[#allocation5 + $0x60] ss:$8 sps:$4 sm:$0xff]   ;;  %v379_v4 = vld [vmem:[#allocation5 + $0x54] ss:$8 sps:$4 sm:$0xff]  }
  0x1c   :  { %258 = vmatpush1.bf16.msra.mxu0 %v375_v1  ;;  %v381_v5 = vld [vmem:[#allocation5 + $0x50] ss:$8 sps:$4 sm:$0xff]   ;;  %v382_v6 = vld [vmem:[#allocation5 + $0x44] ss:$8 sps:$4 sm:$0xff]   ;;  %v384_v7 = vld [vmem:[#allocation5 + $0x40] ss:$8 sps:$4 sm:$0xff]  }
  0x1d   :  { %259 = vmatprep.subr.bf16.mxu0 %v376_v2  ;;  %v385_v8 = vld [vmem:[#allocation5 + $0x34] ss:$8 sps:$4 sm:$0xff]   ;;  %v387_v9 = vld [vmem:[#allocation5 + $0x30] ss:$8 sps:$4 sm:$0xff]   ;;  %v388_v10 = vld [vmem:[#allocation5 + $0x24] ss:$8 sps:$4 sm:$0xff]  }
  0x1e   :  { %v390_v11 = vld [vmem:[#allocation5 + $0x20] ss:$8 sps:$4 sm:$0xff]   ;;  %v391_v12 = vld [vmem:[#allocation5 + $0x14] ss:$8 sps:$4 sm:$0xff]   ;;  %v393_v15 = vld [vmem:[#allocation5 + $0x10] ss:$8 sps:$4 sm:$0xff]  }
  0x1f   :  { %v60_v13 = vld [vmem:[#allocation2 + $0x8] sm:$0xff]  ;;  %v394_v16 = vld [vmem:[#allocation5 + $0x4] ss:$8 sps:$4 sm:$0xff]   ;;  %v396_v17 = vld [vmem:[#allocation5] ss:$8 sps:$4 sm:$0xff]   ;;  %v48_v37 = vshrl.u32 %v47_v36, 7 }
  0x20   :  { %260 = vmatpush1.bf16.msra.mxu0 %v378_v3  ;;  %v62_v14 = vpack.c.bf16 %v60_v13, %v60_v13  ;;  %v397_v18 = vld [vmem:[#allocation5 + $0xf4] ss:$8 sps:$4 sm:$0xff]   ;;  %v399_v19 = vld [vmem:[#allocation5 + $0xf0] ss:$8 sps:$4 sm:$0xff]   ;;  %v400_v20 = vld [vmem:[#allocation5 + $0xe4] ss:$8 sps:$4 sm:$0xff]  }
  0x21   :  { %261 = vmatprep.subr.bf16.mxu0 %v379_v4  ;;  %v402_v21 = vld [vmem:[#allocation5 + $0xe0] ss:$8 sps:$4 sm:$0xff]   ;;  %v403_v22 = vld [vmem:[#allocation5 + $0xd4] ss:$8 sps:$4 sm:$0xff]   ;;  %v405_v23 = vld [vmem:[#allocation5 + $0xd0] ss:$8 sps:$4 sm:$0xff]  }
  0x22   :  { %289 = vmatprep.mubr.bf16.mxu0 %v62_v14  ;;  %v406_v24 = vld [vmem:[#allocation5 + $0xc4] ss:$8 sps:$4 sm:$0xff]   ;;  %v408_v25 = vld [vmem:[#allocation5 + $0xc0] ss:$8 sps:$4 sm:$0xff]   ;;  %v409_v26 = vld [vmem:[#allocation5 + $0xb4] ss:$8 sps:$4 sm:$0xff]  }
  0x23   :  { %v411_v27 = vld [vmem:[#allocation5 + $0xb0] ss:$8 sps:$4 sm:$0xff]   ;;  %v412_v28 = vld [vmem:[#allocation5 + $0xa4] ss:$8 sps:$4 sm:$0xff]   ;;  %v414_v29 = vld [vmem:[#allocation5 + $0xa0] ss:$8 sps:$4 sm:$0xff]  }
  0x24   :  { %262 = vmatpush1.bf16.msra.mxu0 %v381_v5  ;;  %v415_v30 = vld [vmem:[#allocation5 + $0x94] ss:$8 sps:$4 sm:$0xff]   ;;  %v417_v31 = vld [vmem:[#allocation5 + $0x90] ss:$8 sps:$4 sm:$0xff]   ;;  %v418_v32 = vld [vmem:[#allocation5 + $0x84] ss:$8 sps:$4 sm:$0xff]  }
  0x25   :  { %263 = vmatprep.subr.bf16.mxu0 %v382_v6  ;;  %v420_v33 = vld [vmem:[#allocation5 + $0x80] ss:$8 sps:$4 sm:$0xff]   ;;  %v59_v34 = vld [vmem:[#allocation2] sm:$0xff]  ;;  %v49_v38 = vsub.s32 0, %v48_v37  ;;  %v53_v40 = vsub.s32 1, %v48_v37 }
  0x26   :  { %v61_v35 = vpack.c.bf16 %v59_v34, %v59_v34  ;;  %v45_v39 = vld [vmem:[%s532_s2] sm:$0x3]  ;;  %s497_s2 = smov [#allocation7]  }
  0x27   :  { %v50_v41 = vrot.slane %v45_v39, %v49_v38  ;;  %v54_v42 = vrot.slane %v45_v39, %v53_v40  ;;  %s326_s24 = sshll.u32 %s497_s2, 4  ;;  %s327_s24 = int_to_ptr.vmem [resolvable:$true] %s326_s24 }
  0x28   :  { %264 = vmatpush1.bf16.msra.mxu0 %v384_v7  ;;  %s467_s25 = scalar_lea.vmem %s327_s24, 256  ;;  %p472_p11 = scmp.lt.s32.totalorder %s327_s24, %s327_s24 }
  0x29   :  { %265 = vmatprep.subr.bf16.mxu0 %v385_v8  ;;  %p468_p10 = scmp.ne.s32.totalorder %s327_s24, %s467_s25  ;;  %p473_p12 = scmp.lt.s32.totalorder %s467_s25, %s467_s25 }
  0x2b   :  { %p474_p13 = por %p473_p12, %p472_p11 }
  0x2c   :  { %266 = vmatpush1.bf16.msra.mxu0 %v387_v9 }
  0x2d   :  { %267 = vmatprep.subr.bf16.mxu0 %v388_v10  ;;  %p475_p0 = pnand %p474_p13, %p468_p10 }
  0x30   :  { %268 = vmatpush1.bf16.msra.mxu0 %v390_v11 }
  0x31   :  { %269 = vmatprep.subr.bf16.mxu0 %v391_v12 }
  0x34   :  { %270 = vmatpush1.bf16.msra.mxu0 %v393_v15 }
  0x35   :  { %271 = vmatprep.subr.bf16.mxu0 %v394_v16 }
  0x38   :  { %272 = vmatpush1.bf16.msra.mxu0 %v396_v17 }
  0x39   :  { %273 = vmatprep.subr.bf16.mxu0 %v397_v18 }
  0x3c   :  { %274 = vmatpush2.bf16.msra.mxu0 %v399_v19 }
  0x3d   :  { %275 = vmatprep.subr.bf16.mxu0 %v400_v20 }
  0x40   :  { %276 = vmatpush2.bf16.msra.mxu0 %v402_v21 }
  0x41   :  { %277 = vmatprep.subr.bf16.mxu0 %v403_v22 }
  0x44   :  { %278 = vmatpush2.bf16.msra.mxu0 %v405_v23 }
  0x45   :  { %279 = vmatprep.subr.bf16.mxu0 %v406_v24 }
  0x48   :  { %280 = vmatpush2.bf16.msra.mxu0 %v408_v25 }
  0x49   :  { %281 = vmatprep.subr.bf16.mxu0 %v409_v26 }
  0x4c   :  { %282 = vmatpush2.bf16.msra.mxu0 %v411_v27 }
  0x4d   :  { %283 = vmatprep.subr.bf16.mxu0 %v412_v28 }
  0x50   :  { %284 = vmatpush2.bf16.msra.mxu0 %v414_v29 }
  0x51   :  { %285 = vmatprep.subr.bf16.mxu0 %v415_v30 }
  0x54   :  { %286 = vmatpush2.bf16.msra.mxu0 %v417_v31 }
  0x55   :  { %287 = vmatprep.subr.bf16.mxu0 %v418_v32 }
  0x58   :  { %288 = vmatpush2.bf16.msra.mxu0 %v420_v33 }
  0x5b   :  { %290 = vmatmul.mubr.bf16.vlgmr.msra.gmra.mxu0 %v61_v35 }
 0x11b   :  { %v291_v43 = vpop.f32.mrf.mxu0 }
 0x11c   :  { %v298_v44 = vadd.f32 %v291_v43, %v50_v41 }
 0x11d   :  { %v293_v45 = vpop.f32.mrf.mxu0 }
 0x11e   :  { %v299_v46 = vadd.f32 %v293_v45, %v54_v42  ;;  %421 = vtanh.f32 %v298_v44 }
 0x11f   :  { %v295_v47 = vpop.f32.mrf.mxu0 }
 0x120   :  { %423 = vtanh.f32 %v299_v46 }
 0x121   :  { %v296_v48 = vpop.f32.mrf.mxu0 }
 0x12b   :  { %v422_v49 = vpop.eup %421 }
 0x12c   :  { %v309_v51 = vmul.f32 %v422_v49, %v422_v49 }
 0x12d   :  { %v424_v50 = vpop.eup %423 }
 0x12e   :  { %v310_v52 = vmul.f32 %v424_v50, %v424_v50 }
 0x130   :  { %v311_v53 = vadd.f32 %v310_v52, %v309_v51 }
 0x132   :  { %312 = vadd.xlane.f32.xlu0 %v311_v53 }
 0x1bb   :  { %v313_v54 = vpop.xlane.xlu0 %312 }
 0x1bc   :  { %v314_v55 = vmax.f32 %v313_v54, 1e-24 }
 0x1be   :  { %425 = vrsqrt.f32 %v314_v55 }
 0x1cb   :  { %v426_v56 = vpop.eup %425 }
 0x1cc   :  { %v316_v57 = vmul.f32 %v426_v56, %v422_v49  ;;  %v317_v58 = vmul.f32 %v426_v56, %v424_v50 }
 0x1ce   :  { %318 = vst [vmem:[#allocation7] sm:$0xff] %v316_v57  ;;  %319 = vst [vmem:[#allocation7 + $0x8] sm:$0xff] %v317_v58 }
 0x1cf   :  { %478 = shalt.err (!%p475_p0)
}
 0x1d0   :  { %329 = dma.vmem_to_hbm [thread:$0]  %s327_s24, 256, %s533_s3, [#allocation4]  }
 0x1d1   :  { %491 = dma.done.wait [#allocation4], 256  }
 0x1d2   :  { %492 = vsyncadd [#allocation4], 4294967040 }
 0x1d3   :  { %333 = vsyncpa [#allocation3], 1 }
 0x1d4   :  { %334 = vsyncpa [#allocation6], 1 }
 0x1d5   :  { %335 = vsyncpa [#allocation4], 1 }

</bundles_post_ra>
